<compile_context>
chip_gen: v7x
topology: tpu7x:2x2x1
jax: 0.10.0
libtpu: 0.0.40
codegen_flags: <defaults>
</compile_context>

<pallas_src>
import functools

import jax
import jax.numpy as jnp
from jax.experimental import pallas as pl
from jax.experimental.pallas import tpu as pltpu

LANE = 128
SUBLANE = 8

# Weights up to this size (padded bf16) use the resident-W path.
_RESIDENT_W_MAX_BYTES = 8 << 20
# Fixed K tile for the (rare) huge-input_dim streaming fallback.
_FALLBACK_TK = 512
# Conservative per-kernel VMEM budget; fits v7x's 32 MiB scoped-VMEM default.
_VMEM_BUDGET_BYTES = 24 << 20
_VMEM_LIMIT_BYTES = 32 << 20


def _cdiv(a, b):
    return -(-a // b)


def _round_up(x, m):
    return _cdiv(x, m) * m


def _is_resident(D, A_pad):
    return D * A_pad * 2 <= _RESIDENT_W_MAX_BYTES


def _choose_tm(B, tk, A_pad, w_vmem_bytes, *, block_m=1024):
    """Pick the batch tile.

    Starts from a 2-way batch split (so the 'parallel' M axis has >= 2 steps
    and v7x's second TensorCore gets work) and halves until the
    double-buffered f32 x/out tiles plus the weight fit the VMEM budget.
    """
    if B <= SUBLANE:
        return B                       # full extent -> always a legal block
    if B <= block_m:
        tm = max(SUBLANE, _round_up(_cdiv(B, 2), SUBLANE))
    else:
        tm = block_m

    def cost(t):
        # f32 x tile + f32 out tile (double-buffered) + weight footprint.
        return t * tk * 4 * 2 + t * A_pad * 4 * 2 + w_vmem_bytes

    while tm > SUBLANE and cost(tm) > _VMEM_BUDGET_BYTES:
        tm = max(SUBLANE, _round_up(tm // 2, SUBLANE))
    return tm


def _actor_kernel_resident(x_ref, w_ref, b_ref, o_ref):
    """Whole-K linear step: W/bias are VMEM-resident across all batch tiles."""
    # x arrives f32 (no wrapper-side cast pass); convert to the MXU-native
    # bf16 in VMEM right before the matmul (hidden under DMA/MXU).
    x = x_ref[...].astype(w_ref.dtype)
    acc = jnp.dot(x, w_ref[...], preferred_element_type=jnp.float32)
    o_ref[...] = (acc + b_ref[...]).astype(o_ref.dtype)


def _actor_kernel_ktiled(x_ref, w_ref, b_ref, o_ref):
    """Huge-D fallback: K reduction accumulates directly into the f32 output
    tile (resident across k; no scratch, no finalize copy)."""
    k = pl.program_id(1)
    x = x_ref[...].astype(w_ref.dtype)
    part = jnp.dot(x, w_ref[...], preferred_element_type=jnp.float32)

    @pl.when(k == 0)
    def _():
        o_ref[...] = part              # first step writes (no zeros+add pass)

    @pl.when(k > 0)
    def _():
        o_ref[...] += part

    @pl.when(k == pl.num_programs(1) - 1)
    def _():
        o_ref[...] += b_ref[...]


def prepare_actor_params(w, b):
    """One-time parameter prep (hoisted out of the forward pass).

    w: [A, D] float32 (PyTorch nn.Linear layout), b: [A] float32
    Returns:
      w_prepped: [D_pad, A_pad] bfloat16  (zero-padded columns/rows)
      b_prepped: [1, A_pad]    float32    (zero-padded columns)
    """
    A, D = w.shape
    A_pad = _round_up(max(A, LANE), LANE)
    D_pad = D if _is_resident(D, A_pad) else _round_up(D, _FALLBACK_TK)
    w_p = jnp.zeros((D_pad, A_pad), jnp.bfloat16)
    w_p = w_p.at[:D, :A].set(w.T.astype(jnp.bfloat16))
    b_p = jnp.zeros((1, A_pad), jnp.float32)
    b_p = b_p.at[0, :A].set(b.astype(jnp.float32))
    return w_p, b_p


@functools.partial(jax.jit, static_argnames=("num_actions", "block_m"))
def actor_forward(x, w_prepped, b_prepped, *, num_actions, block_m=1024):
    """Linear policy head: logits = x @ W.T + b.

    x:         [B, D] float32
    w_prepped: [D_pad, A_pad] bfloat16 (from prepare_actor_params)
    b_prepped: [1, A_pad] float32
    returns    [B, num_actions] float32
    """
    B, D = x.shape
    D_pad, A_pad = w_prepped.shape

    if _is_resident(D, A_pad):
        assert D_pad == D
        w_vmem = D * A_pad * 2  # single copy: constant index_map -> no re-DMA
        tm = _choose_tm(B, D, A_pad, w_vmem, block_m=block_m)
        grid = (_cdiv(B, tm),)
        out = pl.pallas_call(
            _actor_kernel_resident,
            out_shape=jax.ShapeDtypeStruct((B, A_pad), jnp.float32),
            grid=grid,
            in_specs=[
                pl.BlockSpec((tm, D), lambda i: (i, 0)),       # x tile (f32)
                pl.BlockSpec((D, A_pad), lambda i: (0, 0)),    # W resident
                pl.BlockSpec((1, A_pad), lambda i: (0, 0)),    # bias resident
            ],
            out_specs=pl.BlockSpec((tm, A_pad), lambda i: (i, 0)),
            compiler_params=pltpu.CompilerParams(
                dimension_semantics=("parallel",),
                vmem_limit_bytes=_VMEM_LIMIT_BYTES,
            ),
            cost_estimate=pl.CostEstimate(
                flops=2 * B * D * A_pad,
                transcendentals=0,
                bytes_accessed=B * D * 4        # x read once, f32
                + D * A_pad * 2                 # W read once, bf16
                + A_pad * 4                     # bias
                + B * A_pad * 4,                # logits writeback
            ),
        )(x, w_prepped, b_prepped)
    else:
        # Streaming fallback for very large input_dim (weight > 8 MiB bf16).
        tk = _FALLBACK_TK
        x_p = x if D == D_pad else jnp.pad(x, ((0, 0), (0, D_pad - D)))
        w_vmem = tk * A_pad * 2 * 2             # streamed W tile, double-buffered
        tm = _choose_tm(B, tk, A_pad, w_vmem, block_m=block_m)
        grid_m = _cdiv(B, tm)
        grid = (grid_m, D_pad // tk)
        out = pl.pallas_call(
            _actor_kernel_ktiled,
            out_shape=jax.ShapeDtypeStruct((B, A_pad), jnp.float32),
            grid=grid,
            in_specs=[
                pl.BlockSpec((tm, tk), lambda i, k: (i, k)),
                pl.BlockSpec((tk, A_pad), lambda i, k: (k, 0)),
                pl.BlockSpec((1, A_pad), lambda i, k: (0, 0)),
            ],
            out_specs=pl.BlockSpec((tm, A_pad), lambda i, k: (i, 0)),
            compiler_params=pltpu.CompilerParams(
                dimension_semantics=("parallel", "arbitrary"),
                vmem_limit_bytes=_VMEM_LIMIT_BYTES,
            ),
            cost_estimate=pl.CostEstimate(
                flops=2 * B * D_pad * A_pad,
                transcendentals=0,
                bytes_accessed=B * D_pad * 4
                + grid_m * D_pad * A_pad * 2    # W re-streamed per batch tile
                + A_pad * 4
                + B * A_pad * 4,
            ),
        )(x_p, w_prepped, b_prepped)

    # TODO(synk): fuse the downstream consumer (softmax/argmax over A real
    # columns) to avoid writing the padded 128-wide f32 row to HBM.
    return out[:, :num_actions]


def init_actor_params(input_dim, num_actions):
    """Matches Actor._initialize_weights(): zeros for weight and bias."""
    w = jnp.zeros((num_actions, input_dim), dtype=jnp.float32)   # PyTorch [A, D]
    b = jnp.zeros((num_actions,), dtype=jnp.float32)
    return w, b


if __name__ == "__main__":
    batch = 8
    input_dim = 32
    num_actions = 4

    key = jax.random.PRNGKey(0)
    kx, kw, kb = jax.random.split(key, 3)
    x = jax.random.normal(kx, (batch, input_dim), dtype=jnp.float32)

    # --- Non-vacuous check: random params so a wrong matmul/transpose fails. ---
    w_rand = jax.random.normal(kw, (num_actions, input_dim), dtype=jnp.float32) * 0.1
    b_rand = jax.random.normal(kb, (num_actions,), dtype=jnp.float32) * 0.1
    w_p, b_p = prepare_actor_params(w_rand, b_rand)

    logits = jax.block_until_ready(
        actor_forward(x, w_p, b_p, num_actions=num_actions)
    )

    # Reference with the same bf16 operand quantization + f32 accumulation.
    ref = (
        jnp.dot(
            x.astype(jnp.bfloat16),
            w_rand.T.astype(jnp.bfloat16),
            preferred_element_type=jnp.float32,
        )
        + b_rand
    )
    assert logits.shape == (batch, num_actions)
    assert jnp.allclose(logits, ref, atol=2e-3, rtol=2e-3), (
        float(jnp.max(jnp.abs(logits - ref)))
    )

    # --- Module-semantics check: zero-initialized Actor outputs all zeros. ---
    w0, b0 = init_actor_params(input_dim, num_actions)
    w0_p, b0_p = prepare_actor_params(w0, b0)
    logits0 = jax.block_until_ready(
        actor_forward(x, w0_p, b0_p, num_actions=num_actions)
    )
    assert logits0.shape == (batch, num_actions)
    assert jnp.all(logits0 == 0.0)

    print("KERNEL_OK")
</pallas_src>

<mosaic_0001>
module attributes {stable_mosaic.version = 11 : i64} {
  func.func @_actor_kernel_resident(%arg0: i32, %arg1: memref<8x32xf32, #tpu.memory_space<vmem>>, %arg2: memref<32x128xbf16, #tpu.memory_space<vmem>>, %arg3: memref<1x128xf32, #tpu.memory_space<vmem>>, %arg4: memref<8x128xf32, #tpu.memory_space<vmem>>) attributes {dimension_semantics = [#tpu.dimension_semantics<parallel>], iteration_bounds = array<i64: 1>, scalar_prefetch = 0 : i64, scratch_operands = 0 : i64, tpu.core_type = #tpu.core_type<tc>, window_params = [{transform_indices = @transform_0, window_bounds = array<i64: 8, 32>}, {pipeline_mode = #tpu.pipeline_mode<synchronous>, transform_indices = @transform_1, window_bounds = array<i64: 32, 128>}, {pipeline_mode = #tpu.pipeline_mode<synchronous>, transform_indices = @transform_2, window_bounds = array<i64: 1, 128>}, {transform_indices = @transform_3, window_bounds = array<i64: 8, 128>}]} {
    %c0 = arith.constant 0 : index
    %c0_0 = arith.constant 0 : index
    %0 = vector.load %arg1[%c0, %c0_0] : memref<8x32xf32, #tpu.memory_space<vmem>>, vector<8x32xf32>
    %1 = arith.truncf %0 : vector<8x32xf32> to vector<8x32xbf16>
    %c0_1 = arith.constant 0 : index
    %c0_2 = arith.constant 0 : index
    %2 = vector.load %arg2[%c0_1, %c0_2] : memref<32x128xbf16, #tpu.memory_space<vmem>>, vector<32x128xbf16>
    %cst = arith.constant dense<0.000000e+00> : vector<8x128xf32>
    %3 = tpu.matmul %1, %2, %cst {dimension_numbers = #tpu.dot_dimension_numbers<[1], [0], [0], [1], [0, 0, 1, 1], [], []>} : vector<8x32xbf16>, vector<32x128xbf16>, vector<8x128xf32> -> vector<8x128xf32>
    %c0_3 = arith.constant 0 : index
    %c0_4 = arith.constant 0 : index
    %4 = vector.load %arg3[%c0_3, %c0_4] : memref<1x128xf32, #tpu.memory_space<vmem>>, vector<1x128xf32>
    %5 = vector.broadcast %4 : vector<1x128xf32> to vector<8x128xf32>
    %6 = arith.addf %3, %5 : vector<8x128xf32>
    %c0_5 = arith.constant 0 : index
    %c0_6 = arith.constant 0 : index
    %7 = vector.load %arg4[%c0_5, %c0_6] : memref<8x128xf32, #tpu.memory_space<vmem>>, vector<8x128xf32>
    tpu.vector_store %arg4[%c0_5, %c0_6], %6 {strides = array<i32>} : memref<8x128xf32, #tpu.memory_space<vmem>>, vector<8x128xf32>,
    return
  }
  func.func @transform_0(%arg0: i32) -> (i32, i32) {
    %c0_i32 = arith.constant 0 : i32
    %c0_i32_0 = arith.constant 0 : i32
    return %arg0, %c0_i32 : i32, i32
  }
  func.func @transform_1(%arg0: i32) -> (i32, i32) {
    %c0_i32 = arith.constant 0 : i32
    %c0_i32_0 = arith.constant 0 : i32
    %c0_i32_1 = arith.constant 0 : i32
    return %c0_i32, %c0_i32_0 : i32, i32
  }
  func.func @transform_2(%arg0: i32) -> (i32, i32) {
    %c0_i32 = arith.constant 0 : i32
    %c0_i32_0 = arith.constant 0 : i32
    %c0_i32_1 = arith.constant 0 : i32
    return %c0_i32, %c0_i32_0 : i32, i32
  }
  func.func @transform_3(%arg0: i32) -> (i32, i32) {
    %c0_i32 = arith.constant 0 : i32
    %c0_i32_0 = arith.constant 0 : i32
    return %arg0, %c0_i32 : i32, i32
  }
}

</mosaic_0001>

<bundles_post_ra>
// kernel: actor_forward.1
= control target key start
LH: loop header
LB: loop body
LE: loop exit
PB: predicated region body
PF: predicated region fallthrough
CT: control target
= control target key end

     0   :  { %8 = vsyncpa [#allocation3], 0  ;;  %s251_s0 = inlined_call_operand.hbm [shape: f32[8,32], index: 0, kind: input, shape index: {}]   ;;  %s252_s1 = inlined_call_operand.hbm [shape: bf16[32,128], index: 1, kind: input, shape index: {}]   ;;  %s253_s2 = inlined_call_operand.vmem [shape: f32[1,128], index: 2, kind: input, shape index: {}]   ;;  %s254_s3 = inlined_call_operand.vmem [shape: f32[8,128], index: 3, kind: output, shape index: {}]  }
   0x1   :  { %9 = vsyncpa [#allocation5], 0  ;;  %s188_s12 = smov [#allocation2]   ;;  %s189_s14 = smov [#allocation4]  }
   0x2   :  { %s16_s13 = sshll.u32 %s188_s12, 4  ;;  %s25_s15 = sshll.u32 %s189_s14, 4  ;;  %s17_s13 = int_to_ptr.vmem [resolvable:$true] %s16_s13  ;;  %s214_s15 = int_to_ptr.vmem [resolvable:$true] %s25_s15 }
   0x3   :  { %s140_s18 = scalar_lea.hbm %s251_s0, 128 }
   0x4   :  { %p141_p0 = scmp.ne.s32.totalorder %s251_s0, %s140_s18  ;;  %p144_p1 = scmp.lt.u32.totalorder %s140_s18, %s251_s0 }
   0x6   :  { %p146_p2 = pnand %p144_p1, %p141_p0 }
   0x8   :  { %149 = shalt.err (!%p146_p2)
}
   0x9   :  { %s150_s23 = scalar_lea.vmem %s17_s13, 128  ;;  %p155_p4 = scmp.lt.s32.totalorder %s17_s13, %s17_s13 }
   0xa   :  { %p151_p3 = scmp.ne.s32.totalorder %s17_s13, %s150_s23  ;;  %p156_p5 = scmp.lt.s32.totalorder %s150_s23, %s150_s23 }
   0xc   :  { %p157_p6 = por %p156_p5, %p155_p4 }
   0xe   :  { %p158_p7 = pnand %p157_p6, %p151_p3 }
  0x10   :  { %161 = shalt.err (!%p158_p7)
}
  0x11   :  { %19 = dma.hbm_to_vmem [thread:$0]  %s251_s0, 128, %s17_s13, [#allocation3]  }
  0x12   :  { %s162_s28 = scalar_lea.hbm %s252_s1, 256 }
  0x13   :  { %p163_p8 = scmp.ne.s32.totalorder %s252_s1, %s162_s28  ;;  %p166_p9 = scmp.lt.u32.totalorder %s162_s28, %s252_s1 }
  0x15   :  { %p168_p10 = pnand %p166_p9, %p163_p8 }
  0x17   :  { %171 = shalt.err (!%p168_p10)
}
  0x18   :  { %s172_s6 = scalar_lea.vmem %s214_s15, 256  ;;  %p177_p12 = scmp.lt.s32.totalorder %s214_s15, %s214_s15 }
  0x19   :  { %p173_p11 = scmp.ne.s32.totalorder %s214_s15, %s172_s6  ;;  %p178_p13 = scmp.lt.s32.totalorder %s172_s6, %s172_s6 }
  0x1b   :  { %p179_p0 = por %p178_p13, %p177_p12 }
  0x1d   :  { %p180_p1 = pnand %p179_p0, %p173_p11 }
  0x1f   :  { %183 = shalt.err (!%p180_p1)
}
  0x20   :  { %s190_s0 = smov 64   ;;  %s191_s7 = smov 4  }
  0x21   :  { %31 = dma.hbm_to_vmem [thread:$0]  %s252_s1, 256, %s214_s15, [#allocation5], %s190_s0, %s190_s0, %s191_s7  }
  0x22   :  { %184 = dma.done.wait [#allocation3], 128  }
  0x23   :  { %185 = vsyncadd [#allocation3], 4294967168 }
  0x24   :  { %186 = dma.done.wait [#allocation5], 256  }
  0x25   :  { %187 = vsyncadd [#allocation5], 4294967040  ;;  %v192_v0 = vmov 0.0   ;;  %vm193_vm0 = vmmov 0   ;;  %v138_v1 = vld [vmem:[#allocation4] sm:$0xff]   ;;  %v139_v2 = vld [vmem:[#allocation4 + $0x8] sm:$0xff]  }
  0x26   :  { %124 = vmatprep.subr.bf16.mxu0 %v192_v0  ;;  %128 = vmatprep.mubr.msk.bf16.mxu0 %vm193_vm0, %v192_v0  ;;  %v41_v3 = vld [vmem:[#allocation2] sm:$0xff]  ;;  %vm66_vm1 = vcmask 261120  }
  0x27   :  { %125 = vmatpush3.bf16.msra.mxu0 %v138_v1  ;;  %v42_v4 = vpack.c.bf16 %v41_v3, %v41_v3  ;;  %v117_v5 = vld [vmem:[%s253_s2] ss:$0 sm:$0xff] }
  0x28   :  { %126 = vmatprep.subr.bf16.mxu0 %v192_v0 }
  0x2b   :  { %127 = vmatpush3.bf16.msra.mxu0 %v139_v2 }
  0x2e   :  { %129 = vmatmul.mubr.msk.bf16.vlgmr.msra.gmra.mrb[0].mxu0 %vm66_vm1, %v42_v4 }
 0x101   :  { %v104_v6 = vpop.f32.mrb[0].mxu0 }
 0x102   :  { %v105_v7 = vadd.f32 %v117_v5, %v104_v6  ;;  %v130_v8 = vpop.f32.mrb[1].mxu0 }
 0x103   :  { %v107_v9 = vpop.f32.mrb[2].mxu0 }
 0x104   :  { %110 = vst [vmem:[%s254_s3] sm:$0xff] %v105_v7  ;;  %v131_v10 = vpop.f32.mrb[3].mxu0 }
 0x105   :  { %115 = vsyncpa [#allocation3], 1 }
 0x106   :  { %116 = vsyncpa [#allocation5], 1 }

</bundles_post_ra>
